<compile_context>
chip_gen: v7x
topology: tpu7x:2x2x1
jax: 0.10.0
libtpu: 0.0.40
codegen_flags: <defaults>
</compile_context>

<pallas_src>
import functools

import numpy as np
import jax
import jax.numpy as jnp
from jax.experimental import pallas as pl
from jax.experimental.pallas import tpu as pltpu


def _round_up(x, m):
    return ((x + m - 1) // m) * m


def _varloss_partial_kernel(logit_ref, inst_ref, acc_ref, lhs_ref, *,
                            num_classes, c_pad, mi_pad, tiles_per_split,
                            hw, needs_mask, use_bf16_matmul):
    # logit_ref: (C, T) float     inst_ref: (1, T) int
    # acc_ref:   (R_PAD, MI_PAD) f32 output block (resident across the t axis)
    # lhs_ref:   (R_PAD, T) f32 scratch holding the fused MXU LHS
    s_idx = pl.program_id(1)
    t_idx = pl.program_id(2)
    tile_hw = logit_ref.shape[-1]

    @pl.when(t_idx == 0)
    def _init():
        acc_ref[...] = jnp.zeros_like(acc_ref)
        lhs_ref[...] = jnp.zeros_like(lhs_ref)
        # constant "ones" row -> exact integer pixel counts n from the same matmul
        lhs_ref[2 * c_pad:2 * c_pad + 1, :] = jnp.ones((1, tile_hw), jnp.float32)

    x = logit_ref[...].astype(jnp.float32)                 # (C, T)
    inst = inst_ref[...].astype(jnp.int32)                 # (1, T)

    if needs_mask:
        # Tail / duplicated-tile mask against the static H*W (no wrapper pad).
        lane = jax.lax.broadcasted_iota(jnp.int32, (1, tile_hw), 1)
        gidx = (s_idx * tiles_per_split + t_idx) * tile_hw + lane
        valid = gidx < hw                                  # (1, T) bool
        x = jnp.where(valid, x, 0.0)                       # keep softmax finite
        inst = jnp.where(valid, inst, 0)                   # 0 = background -> excluded

    # Channel softmax; exact reciprocal (EUP + refinement, negligible here).
    m = jnp.max(x, axis=0, keepdims=True)                  # (1, T)
    e = jnp.exp(x - m)                                     # (C, T)
    p = e * pl.reciprocal(jnp.sum(e, axis=0, keepdims=True))

    # Fused LHS rows: [0:C) = p, [c_pad:c_pad+C) = p^2, row 2*c_pad = ones.
    lhs_ref[0:num_classes, :] = p
    lhs_ref[c_pad:c_pad + num_classes, :] = p * p

    # One-hot over instance ids 1..mi_pad (id 0 = background excluded).
    ids = jax.lax.broadcasted_iota(jnp.int32, (mi_pad, tile_hw), 0) + 1
    oh = (inst == ids).astype(jnp.float32)                 # (MI_PAD, T)

    lhs = lhs_ref[...]
    if use_bf16_matmul:                                    # optional: native-rate MXU
        lhs = lhs.astype(jnp.bfloat16)
        oh = oh.astype(jnp.bfloat16)

    # Single MXU contraction over the spatial (lane) axis of both operands:
    #   acc[r, m] += sum_x lhs[r, x] * oh[m, x]
    dims = (((1,), (1,)), ((), ()))
    acc_ref[...] += jax.lax.dot_general(lhs, oh, dims,
                                        preferred_element_type=jnp.float32)


def variance_loss(logit, inst_gt, *, max_inst, tile_hw=None, nsplit=None,
                  use_bf16_matmul=False):
    """Pallas implementation of VarianceLoss.forward (forward-only).

    logit:   (B, C, H, W) float (any float dtype; cast to f32 in-kernel)
    inst_gt: (B, H, W)    integer instance labels, 0 = background, ids <= max_inst
    """
    B, C, H, W = logit.shape
    HW = H * W
    c_pad = _round_up(C, 8)          # 8-aligned sublane offsets in the fused LHS
    r_pad = 2 * c_pad + 8            # rows: [p | pad | p^2 | pad | ones | pad]
    mi_pad = _round_up(max_inst, 8)  # sublane-pad the one-hot

    if not jnp.issubdtype(jnp.asarray(inst_gt).dtype, jnp.integer):
        inst_gt = jnp.asarray(inst_gt).astype(jnp.int32)

    # Device VMEM -> scoped limit and tile size (re-derived per generation).
    try:
        vmem_phys = pltpu.get_tpu_info().vmem_capacity_bytes
    except Exception:
        vmem_phys = 64 * 1024 * 1024                       # conservative (v7x per-TC)
    vmem_limit = max(32 * 1024 * 1024,
                     min(int(vmem_phys * 3 // 4), 100 * 1024 * 1024))

    hw_128 = _round_up(HW, 128)
    if tile_hw is None:
        logit_bpe = jnp.dtype(logit.dtype).itemsize
        inst_bpe = jnp.dtype(inst_gt.dtype).itemsize
        # bytes per spatial lane: double-buffered inputs + f32 intermediates
        per_lane = (2 * C * logit_bpe + 2 * inst_bpe
                    + 4 * (3 * C + r_pad + mi_pad + 8))
        tile_hw = (vmem_limit // 2) // per_lane
    tile_hw = min(int(tile_hw), 65536, hw_128)
    tile_hw = max(128, (tile_hw // 128) * 128)

    num_tiles = -(-HW // tile_hw)
    if nsplit is None:
        # Give the v7x megacore something to split when B is 1 / odd.
        nsplit = 2 if (B % 2 == 1 and num_tiles >= 2) else 1
    tiles_per_split = -(-num_tiles // nsplit)
    needs_mask = (nsplit * tiles_per_split * tile_hw != HW)

    logit_f = logit.reshape(B, C, HW)                      # no padding copy
    inst_f = inst_gt.reshape(B, 1, HW)                     # keep native int dtype

    if nsplit == 1:
        def in_map(b, s, t):
            return (b, 0, t)
    else:
        def in_map(b, s, t):
            # Clamp duplicated tiles (odd num_tiles) to a valid block; the
            # in-kernel mask zeroes their contribution exactly.
            return (b, 0, jnp.minimum(s * tiles_per_split + t, num_tiles - 1))

    acc = pl.pallas_call(
        functools.partial(_varloss_partial_kernel,
                          num_classes=C, c_pad=c_pad, mi_pad=mi_pad,
                          tiles_per_split=tiles_per_split, hw=HW,
                          needs_mask=needs_mask,
                          use_bf16_matmul=use_bf16_matmul),
        out_shape=jax.ShapeDtypeStruct((B, nsplit, r_pad, mi_pad), jnp.float32),
        grid_spec=pltpu.PrefetchScalarGridSpec(
            num_scalar_prefetch=0,
            grid=(B, nsplit, tiles_per_split),
            in_specs=[
                pl.BlockSpec((None, C, tile_hw), in_map),
                pl.BlockSpec((None, 1, tile_hw), in_map),
            ],
            out_specs=pl.BlockSpec((None, None, r_pad, mi_pad),
                                   lambda b, s, t: (b, s, 0, 0)),
            scratch_shapes=[pltpu.VMEM((r_pad, tile_hw), jnp.float32)],
        ),
        compiler_params=pltpu.CompilerParams(
            dimension_semantics=("parallel", "parallel", "arbitrary"),
            vmem_limit_bytes=vmem_limit),
    )(logit_f, inst_f)

    # ---- trivial finalize in XLA (exact over the additive spatial splits) ----
    acc = acc.sum(axis=1)                                  # (B, r_pad, mi_pad)
    s_sum = acc[:, :C, :]                                  # (B, C, MI)
    ss_sum = acc[:, c_pad:c_pad + C, :]                    # (B, C, MI)
    n = acc[:, 2 * c_pad, :]                               # (B, MI) exact pixel counts
    ids_ok = (jnp.arange(mi_pad) < max_inst)[None, :]
    n_safe = jnp.maximum(n, 2.0)[:, None, :]               # exact whenever n > 1
    # unbiased per-channel variance (torch.var default correction=1), clamped >= 0
    var = jnp.maximum((ss_sum - s_sum * s_sum / n_safe) / (n_safe - 1.0), 0.0)
    var_sum = jnp.sum(var, axis=1)                         # (B, MI)
    valid = jnp.logical_and(n > 1.0, ids_ok)
    present = jnp.logical_and(n > 0.0, ids_ok)
    sum_var = jnp.sum(jnp.where(valid, var_sum, 0.0), axis=1)
    count = jnp.sum(present.astype(jnp.float32), axis=1)
    return jnp.mean(sum_var / (count + 1e-8))


def _reference_loss(logit, inst_gt, max_inst):
    """Pure numpy re-implementation of the PyTorch forward, for verification."""
    p = np.asarray(jax.nn.softmax(jnp.asarray(logit, jnp.float32), axis=1))
    g = np.asarray(inst_gt)
    B, C, H, W = p.shape
    total = 0.0
    for k in range(B):
        pk = p[k].reshape(C, -1)
        gk = g[k].reshape(-1)
        inst_ids = [i for i in np.unique(gk) if i != 0]
        sum_var = 0.0
        for inst_id in inst_ids:
            mask = gk == inst_id
            if mask.sum() > 1:
                vals = pk[:, mask]
                sum_var += float(np.var(vals, axis=1, ddof=1).sum())
        total += sum_var / (len(inst_ids) + 1e-8)
    return total / B


if __name__ == "__main__":
    key = jax.random.PRNGKey(0)
    k1, k2, k3, k4 = jax.random.split(key, 4)

    # Case 1: B=2, H*W divisible by the tile -> plain accumulation path (nsplit=1).
    B, C, H, W, MAX_INST = 2, 4, 16, 16, 6
    logit = jax.random.normal(k1, (B, C, H, W), dtype=jnp.float32)
    inst_gt = jax.random.randint(k2, (B, H, W), 0, MAX_INST + 1, dtype=jnp.int32)
    loss = jax.block_until_ready(
        variance_loss(logit, inst_gt, max_inst=MAX_INST, tile_hw=128))
    ref = _reference_loss(logit, inst_gt, MAX_INST)
    assert abs(float(loss) - ref) < 1e-3, (float(loss), ref)

    # Case 2: B=1, H*W not tile-divisible -> megacore split (nsplit=2), clamped
    # duplicate tile and in-kernel tail masking.
    B2, H2, W2, MAX_INST2 = 1, 16, 20, 5
    logit2 = jax.random.normal(k3, (B2, C, H2, W2), dtype=jnp.float32)
    inst_gt2 = jax.random.randint(k4, (B2, H2, W2), 0, MAX_INST2 + 1, dtype=jnp.int32)
    loss2 = jax.block_until_ready(
        variance_loss(logit2, inst_gt2, max_inst=MAX_INST2, tile_hw=128))
    ref2 = _reference_loss(logit2, inst_gt2, MAX_INST2)
    assert abs(float(loss2) - ref2) < 1e-3, (float(loss2), ref2)

    print("KERNEL_OK")
</pallas_src>

<mosaic_0001>
module attributes {stable_mosaic.version = 11 : i64} {
  func.func @_varloss_partial_kernel(%arg0: i32, %arg1: i32, %arg2: i32, %arg3: memref<1x4x128xf32, #tpu.memory_space<vmem>>, %arg4: memref<1x1x128xi32, #tpu.memory_space<vmem>>, %arg5: memref<1x1x24x8xf32, #tpu.memory_space<vmem>>, %arg6: memref<24x128xf32, #tpu.memory_space<vmem>>) attributes {dimension_semantics = [#tpu.dimension_semantics<parallel>, #tpu.dimension_semantics<parallel>, #tpu.dimension_semantics<arbitrary>], iteration_bounds = array<i64: 2, 1, 2>, scalar_prefetch = 0 : i64, scratch_operands = 1 : i64, tpu.core_type = #tpu.core_type<tc>, window_params = [{transform_indices = @transform_0, window_bounds = array<i64: 1, 4, 128>}, {transform_indices = @transform_1, window_bounds = array<i64: 1, 1, 128>}, {transform_indices = @transform_2, window_bounds = array<i64: 1, 1, 24, 8>}]} {
    %c0_i32 = arith.constant 0 : i32
    %0 = arith.cmpi eq, %arg2, %c0_i32 : i32
    %1 = arith.extui %0 : i1 to i32
    %c0_i32_0 = arith.constant 0 : i32
    %2 = arith.cmpi ne, %1, %c0_i32_0 : i32
    scf.if %2 {
      %cst_21 = arith.constant 0.000000e+00 : f32
      %35 = vector.broadcast %cst_21 : f32 to vector<24x8xf32>
      %c0_22 = arith.constant 0 : index
      %c0_23 = arith.constant 0 : index
      %c0_24 = arith.constant 0 : index
      %c0_25 = arith.constant 0 : index
      %36 = vector.load %arg5[%c0_22, %c0_23, %c0_24, %c0_25] : memref<1x1x24x8xf32, #tpu.memory_space<vmem>>, vector<1x1x24x8xf32>
      %37 = vector.shape_cast %36 : vector<1x1x24x8xf32> to vector<24x8xf32>
      %38 = vector.shape_cast %35 : vector<24x8xf32> to vector<1x1x24x8xf32>
      tpu.vector_store %arg5[%c0_22, %c0_23, %c0_24, %c0_25], %38 {strides = array<i32>} : memref<1x1x24x8xf32, #tpu.memory_space<vmem>>, vector<1x1x24x8xf32>,
      %cst_26 = arith.constant 0.000000e+00 : f32
      %39 = vector.broadcast %cst_26 : f32 to vector<24x128xf32>
      %c0_27 = arith.constant 0 : index
      %c0_28 = arith.constant 0 : index
      %40 = vector.load %arg6[%c0_27, %c0_28] : memref<24x128xf32, #tpu.memory_space<vmem>>, vector<24x128xf32>
      tpu.vector_store %arg6[%c0_27, %c0_28], %39 {strides = array<i32>} : memref<24x128xf32, #tpu.memory_space<vmem>>, vector<24x128xf32>,
      %cst_29 = arith.constant 1.000000e+00 : f32
      %41 = vector.broadcast %cst_29 : f32 to vector<1x128xf32>
      %c16 = arith.constant 16 : index
      %c0_30 = arith.constant 0 : index
      %42 = vector.load %arg6[%c16, %c0_30] : memref<24x128xf32, #tpu.memory_space<vmem>>, vector<1x128xf32>
      tpu.vector_store %arg6[%c16, %c0_30], %41 {strides = array<i32>} : memref<24x128xf32, #tpu.memory_space<vmem>>, vector<1x128xf32>,
    } else {
    }
    %c0 = arith.constant 0 : index
    %c0_1 = arith.constant 0 : index
    %c0_2 = arith.constant 0 : index
    %3 = vector.load %arg3[%c0, %c0_1, %c0_2] : memref<1x4x128xf32, #tpu.memory_space<vmem>>, vector<1x4x128xf32>
    %4 = vector.shape_cast %3 : vector<1x4x128xf32> to vector<4x128xf32>
    %c0_3 = arith.constant 0 : index
    %c0_4 = arith.constant 0 : index
    %c0_5 = arith.constant 0 : index
    %5 = vector.load %arg4[%c0_3, %c0_4, %c0_5] : memref<1x1x128xi32, #tpu.memory_space<vmem>>, vector<1x1x128xi32>
    %6 = vector.shape_cast %5 : vector<1x1x128xi32> to vector<1x128xi32>
    %cst = arith.constant dense<0xFF800000> : vector<128xf32>
    %7 = vector.multi_reduction <maximumf>, %4, %cst [0] : vector<4x128xf32> to vector<128xf32>
    %8 = vector.shape_cast %7 : vector<128xf32> to vector<1x128xf32>
    %9 = vector.broadcast %8 : vector<1x128xf32> to vector<4x128xf32>
    %10 = arith.subf %4, %9 : vector<4x128xf32>
    %11 = math.exp %10 : vector<4x128xf32>
    %cst_6 = arith.constant dense<0.000000e+00> : vector<128xf32>
    %12 = vector.multi_reduction <add>, %11, %cst_6 [0] : vector<4x128xf32> to vector<128xf32>
    %13 = vector.shape_cast %12 : vector<128xf32> to vector<1x128xf32>
    %14 = tpu.reciprocal %13 : vector<1x128xf32> -> vector<1x128xf32>
    %15 = vector.broadcast %14 : vector<1x128xf32> to vector<4x128xf32>
    %16 = arith.mulf %11, %15 : vector<4x128xf32>
    %c0_7 = arith.constant 0 : index
    %c0_8 = arith.constant 0 : index
    %17 = vector.load %arg6[%c0_7, %c0_8] : memref<24x128xf32, #tpu.memory_space<vmem>>, vector<4x128xf32>
    tpu.vector_store %arg6[%c0_7, %c0_8], %16 {strides = array<i32>} : memref<24x128xf32, #tpu.memory_space<vmem>>, vector<4x128xf32>,
    %18 = arith.mulf %16, %16 : vector<4x128xf32>
    %c8 = arith.constant 8 : index
    %c0_9 = arith.constant 0 : index
    %19 = vector.load %arg6[%c8, %c0_9] : memref<24x128xf32, #tpu.memory_space<vmem>>, vector<4x128xf32>
    tpu.vector_store %arg6[%c8, %c0_9], %18 {strides = array<i32>} : memref<24x128xf32, #tpu.memory_space<vmem>>, vector<4x128xf32>,
    %20 = tpu.iota {dimensions = array<i32: 0>} : vector<8x128xi32>
    %c1_i32 = arith.constant 1 : i32
    %21 = vector.broadcast %c1_i32 : i32 to vector<8x128xi32>
    %22 = arith.addi %20, %21 : vector<8x128xi32>
    %23 = vector.broadcast %6 : vector<1x128xi32> to vector<8x128xi32>
    %24 = arith.cmpi eq, %23, %22 : vector<8x128xi32>
    %25 = arith.extui %24 : vector<8x128xi1> to vector<8x128xi32>
    %26 = arith.sitofp %25 : vector<8x128xi32> to vector<8x128xf32>
    %c0_10 = arith.constant 0 : index
    %c0_11 = arith.constant 0 : index
    %27 = vector.load %arg6[%c0_10, %c0_11] : memref<24x128xf32, #tpu.memory_space<vmem>>, vector<24x128xf32>
    %c0_12 = arith.constant 0 : index
    %c0_13 = arith.constant 0 : index
    %c0_14 = arith.constant 0 : index
    %c0_15 = arith.constant 0 : index
    %28 = vector.load %arg5[%c0_12, %c0_13, %c0_14, %c0_15] : memref<1x1x24x8xf32, #tpu.memory_space<vmem>>, vector<1x1x24x8xf32>
    %29 = vector.shape_cast %28 : vector<1x1x24x8xf32> to vector<24x8xf32>
    %cst_16 = arith.constant dense<0.000000e+00> : vector<24x8xf32>
    %30 = tpu.matmul %27, %26, %cst_16 {dimension_numbers = #tpu.dot_dimension_numbers<[1], [1], [0], [0], [0, 0, 1, 0], [], []>} : vector<24x128xf32>, vector<8x128xf32>, vector<24x8xf32> -> vector<24x8xf32>
    %31 = arith.addf %29, %30 : vector<24x8xf32>
    %c0_17 = arith.constant 0 : index
    %c0_18 = arith.constant 0 : index
    %c0_19 = arith.constant 0 : index
    %c0_20 = arith.constant 0 : index
    %32 = vector.load %arg5[%c0_17, %c0_18, %c0_19, %c0_20] : memref<1x1x24x8xf32, #tpu.memory_space<vmem>>, vector<1x1x24x8xf32>
    %33 = vector.shape_cast %32 : vector<1x1x24x8xf32> to vector<24x8xf32>
    %34 = vector.shape_cast %31 : vector<24x8xf32> to vector<1x1x24x8xf32>
    tpu.vector_store %arg5[%c0_17, %c0_18, %c0_19, %c0_20], %34 {strides = array<i32>} : memref<1x1x24x8xf32, #tpu.memory_space<vmem>>, vector<1x1x24x8xf32>,
    return
  }
  func.func @transform_0(%arg0: i32, %arg1: i32, %arg2: i32) -> (i32, i32, i32) {
    %c0_i32 = arith.constant 0 : i32
    %c0_i32_0 = arith.constant 0 : i32
    return %arg0, %c0_i32, %arg2 : i32, i32, i32
  }
  func.func @transform_1(%arg0: i32, %arg1: i32, %arg2: i32) -> (i32, i32, i32) {
    %c0_i32 = arith.constant 0 : i32
    %c0_i32_0 = arith.constant 0 : i32
    return %arg0, %c0_i32, %arg2 : i32, i32, i32
  }
  func.func @transform_2(%arg0: i32, %arg1: i32, %arg2: i32) -> (i32, i32, i32, i32) {
    %c0_i32 = arith.constant 0 : i32
    %c0_i32_0 = arith.constant 0 : i32
    %c0_i32_1 = arith.constant 0 : i32
    return %arg0, %arg1, %c0_i32, %c0_i32_0 : i32, i32, i32, i32
  }
}

</mosaic_0001>

<bundles_post_ra>
// kernel: tpu_custom_call.1
= control target key start
LH: loop header
LB: loop body
LE: loop exit
PB: predicated region body
PF: predicated region fallthrough
CT: control target
= control target key end

     0   :  { %7 = vsyncpa [#allocation4], 0  ;;  %s991_s0 = inlined_call_operand.hbm [shape: f32[2,4,256], index: 0, kind: input, shape index: {}]   ;;  %s992_s1 = inlined_call_operand.hbm [shape: s32[2,1,256], index: 1, kind: input, shape index: {}]   ;;  %s993_s2 = inlined_call_operand.vmem [shape: f32[2,1,24,8], index: 2, kind: output, shape index: {}]  }
   0x1   :  { %9 = vsyncpa [#allocation4 + $0x1], 0 }
   0x2   :  { %10 = vsyncpa [#allocation6], 0 }
   0x3   :  { %12 = vsyncpa [#allocation6 + $0x1], 0  ;;  %s772_s9 = smov 0   ;;  %s774_s10 = smov 0  }
   0x4   :  { %s776_s11 = smov 0   ;;  %s778_s12 = smov 0  }
   0x5   :  { %s780_s13 = smov 0   ;;  %s782_s14 = smov 0  }
   0x6   :  { %s784_s15 = smov 0   ;;  %s786_s16 = smov 0  }
   0x7 LB: > { %s497_s17 = sadd.s32 4294967295, %s748_s16   ;;  %s30_s18 = sadd.s32 1, %s740_s14  ;;  %s748_s16 = sphi %s786_s16, %s18_s16   ;;  %s744_s15 = sphi %s784_s15, %s1009_s15   ;;  %s740_s14 = sphi %s782_s14, %s1008_s14   ;;  %s736_s13 = sphi %s780_s13, %s1007_s13   ;;  %s732_s12 = sphi %s778_s12, %s1006_s12   ;;  %s728_s11 = sphi %s776_s11, %s1005_s11   ;;  %s724_s10 = sphi %s774_s10, %s1004_s10   ;;  %s720_s9 = sphi %s772_s9, %s1003_s9  }
   0x8   : > { %p31_p0 = scmp.ge.s32.totalorder %s30_s18, 2  ;;  %s37_s19 = sadd.s32 1, %s744_s15 }
   0x9   : > { %s46_s20 = sadd.s32 1, %s728_s11  ;;  %p53_p1 = scmp.ne.s32.totalorder %s728_s11, %s724_s10 }
   0xa   : > { %s1011_s18 = smov (%p31_p0, %s30_s18), 0  ;;  %s1013_s19 = smov (!%p31_p0, %s37_s19), %s744_s15 }
   0xb   : > { %s42_s21 = ssub.s32 %s740_s14, %s1011_s18  ;;  %p54_p2 = scmp.eq.s32.totalorder %s748_s16, 0 }
   0xc   : > { %p39_p3 = scmp.ge.s32.totalorder %s1013_s19, 2  ;;  %p59_p4 = scmp.ne.s32.totalorder %s724_s10, %s720_s9 }
   0xd   : > { %p823_p5 = por %p54_p2, %p53_p1  ;;  %p60_p6 = scmp.eq.s32.totalorder %s497_s17, 0 }
   0xe   : > { %s1015_s19 = smov (%p39_p3, %s1013_s19), 0  ;;  %p544_p8 = scmp.lt.s32.totalorder %s748_s16, 4 }
   0xf   : > { %p829_p7 = por %p60_p6, %p59_p4  ;;  %s41_s24 = ssub.s32 %s744_s15, %s1015_s19 }
  0x10   : > { %s43_s25 = sor.u32 %s42_s21, %s41_s24  ;;  %s837_s26 = sand.u32 1, %s728_s11  }
  0x11   : > { %s996_s23 = scalar_select %p829_p7, 1, 0 }
  0x12   : > { %p44_p9 = scmp.eq.s32.totalorder %s43_s25, 0  ;;  %s501_s27 = sshll.u32 %s837_s26, 2 }
  0x13   : > { %s502_s28 = sshll.u32 %s744_s15, 1  ;;  %s143_s4 = scalar_lea.vmem [#allocation3], %s501_s27 }
  0x14   : > { %s842_s29 = scalar_select %p44_p9, %s728_s11, %s46_s20  }
  0x15   : > { %s845_s30 = sadd.s32 %s740_s14, %s502_s28  ;;  %s152_s5 = sshll.u32 %s143_s4, 4  ;;  %s853_s5 = int_to_ptr.vmem [resolvable:$true] %s152_s5 }
  0x16   : > { %s503_s3 = sshll.u32 %s845_s30, 6  ;;  %p859_p10 = pnand %p544_p8, %p823_p5 }
  0x17   : > { %s851_s8 = scalar_lea.hbm %s991_s0, %s503_s3  ;;  %s140_s17 = scalar_lea.sflag [#allocation4], %s837_s26 }
  0x18   : > { %s618_s20 = scalar_lea.hbm %s851_s8, 64  ;;  %p620_p0 = pneg %p859_p10 }
  0x19   : > { %p619_p13 = scmp.ne.s32.totalorder %s851_s8, %s618_s20  ;;  %s623_s24 = scalar_lea.hbm %s991_s0, 256 }
  0x1a   : > { %p624_p3 = scmp.lt.u32.totalorder %s851_s8, %s991_s0  ;;  %p625_p4 = scmp.lt.u32.totalorder %s623_s24, %s618_s20 }
  0x1b   : > { %p621_p1 = pnand %p620_p0, %p619_p13  ;;  %p627_p6 = scmp.lt.u32.totalorder %s618_s20, %s851_s8 }
  0x1c   : > { %p626_p5 = por %p625_p4, %p624_p3 }
  0x1d   : > { %p622_p2 = pneg %p621_p1 }
  0x1e   : > { %p628_p8 = por %p627_p6, %p626_p5 }
  0x20   : > { %p629_p9 = pnand %p628_p8, %p622_p2 }
  0x22   : > { %632 = shalt.err (!%p629_p9)
}
  0x23   : > { %s633_s28 = scalar_lea.vmem %s853_s5, 64  ;;  %s750_s3 = smov [#allocation3]  }
  0x24   : > { %p634_p13 = scmp.ne.s32.totalorder %s853_s5, %s633_s28  ;;  %s638_s4 = sshll.u32 %s750_s3, 4  ;;  %s639_s4 = int_to_ptr.vmem [resolvable:$false] %s638_s4 }
  0x25   : > { %s640_s6 = scalar_lea.vmem %s639_s4, 128  ;;  %p641_p12 = scmp.lt.s32.totalorder %s853_s5, %s639_s4 }
  0x26   : > { %p636_p1 = pnand %p634_p13, %p620_p0  ;;  %p642_p3 = scmp.lt.s32.totalorder %s640_s6, %s633_s28 }
  0x28   : > { %p637_p11 = pneg %p636_p1  ;;  %p643_p4 = por %p642_p3, %p641_p12 }
  0x2a   : > { %p644_p5 = pnand %p643_p4, %p637_p11 }
  0x2c   : > { %647 = shalt.err (!%p644_p5)
}
  0x2d   : > { %540 = dma.hbm_to_vmem [thread:$0]  (!%p859_p10), %s851_s8, 64, %s853_s5, %s140_s17  }
  0x2e   : > { %p998_p2 = scmp.lt.s32.totalorder %s748_s16, 5  ;;  %p999_p6 = scmp.ge.s32.totalorder %s748_s16, 1 }
  0x2f   : > { %s505_s20 = sshll.u32 %s845_s30, 4  ;;  %s162_s25 = scalar_lea.vmem [#allocation5], %s837_s26 }
  0x30   : > { %p895_p8 = pnand %p999_p6, %p998_p2  ;;  %s903_s24 = scalar_lea.hbm %s992_s1, %s505_s20 }
  0x31   : > { %s171_s27 = sshll.u32 %s162_s25, 4  ;;  %s160_s5 = scalar_lea.sflag [#allocation6], %s837_s26  ;;  %s172_s27 = int_to_ptr.vmem [resolvable:$true] %s171_s27 }
  0x32   : > { %s1000_s7 = scalar_select %p895_p8, 1, 0 }
  0x33   : > { %s648_s8 = scalar_lea.hbm %s903_s24, 16  ;;  %s653_s28 = scalar_lea.hbm %s992_s1, 64 }
  0x34   : > { %p649_p11 = scmp.ne.s32.totalorder %s903_s24, %s648_s8  ;;  %p654_p13 = scmp.lt.u32.totalorder %s903_s24, %s992_s1 }
  0x35   : > { %p655_p1 = scmp.lt.u32.totalorder %s653_s28, %s648_s8  ;;  %p657_p4 = scmp.lt.u32.totalorder %s648_s8, %s903_s24 }
  0x36   : > { %p651_p12 = pnand %p649_p11, %p620_p0 }
  0x37   : > { %p656_p3 = por %p655_p1, %p654_p13 }
  0x38   : > { %p652_p9 = pneg %p651_p12 }
  0x39   : > { %p658_p5 = por %p657_p4, %p656_p3 }
  0x3b   : > { %p659_p2 = pnand %p658_p5, %p652_p9 }
  0x3d   : > { %662 = shalt.err (!%p659_p2)
}
  0x3e   : > { %s663_s26 = scalar_lea.vmem %s172_s27, 16  ;;  %s751_s6 = smov [#allocation5]  }
  0x3f   : > { %p664_p6 = scmp.ne.s32.totalorder %s172_s27, %s663_s26  ;;  %s668_s20 = sshll.u32 %s751_s6, 4  ;;  %s669_s20 = int_to_ptr.vmem [resolvable:$false] %s668_s20 }
  0x40   : > { %s670_s21 = scalar_lea.vmem %s669_s20, 32  ;;  %p671_p7 = scmp.lt.s32.totalorder %s172_s27, %s669_s20 }
  0x41   : > { %p666_p11 = pnand %p664_p6, %p620_p0  ;;  %p672_p8 = scmp.lt.s32.totalorder %s670_s21, %s663_s26 }
  0x43   : > { %p667_p12 = pneg %p666_p11  ;;  %p673_p1 = por %p672_p8, %p671_p7 }
  0x45   : > { %p674_p13 = pnand %p673_p1, %p667_p12 }
  0x47   : > { %677 = shalt.err (!%p674_p13)
}
  0x48   : > { %543 = dma.hbm_to_vmem [thread:$0]  (!%p859_p10), %s903_s24, 16, %s172_s27, %s160_s5  }
  0x49   : > { %p1001_p9 = scmp.ne.s32.totalorder %s1000_s7, 0 }
  0x4a   : > { %s929_s22 = sand.u32 (!%p1001_p9), 1, %s724_s10   ;;  %p1002_p0 = scmp.ne.s32.totalorder (!%p1001_p9), %s996_s23, 0 }
  0x4b   : > { %180 = sbr.rel (%p1001_p9) target bundleno = 378 (0x17a), region = 28  ;;  %s507_s25 = sshll.u32 (!%p1001_p9), %s929_s22, 2 }
  0x4c   : > { %s183_s8 = scalar_lea.sflag (!%p1001_p9), [#allocation4], %s929_s22  ;;  %s186_s30 = scalar_lea.vmem (!%p1001_p9), [#allocation3], %s507_s25 }
  0x52   : > { %711 = dma.done.wait (%p1002_p0), %s183_s8, 64  }
  0x53   : > { %713 = vsyncadd (%p1002_p0), %s183_s8, 4294967232  ;;  %s192_s9 = scalar_lea.sflag [#allocation6], %s929_s22  ;;  %s194_s7 = scalar_lea.vmem [#allocation5], %s929_s22 }
  0x54   : > { %715 = dma.done.wait (%p1002_p0), %s192_s9, 16  }
  0x55   : > { %717 = vsyncadd (%p1002_p0), %s192_s9, 4294967280  ;;  %p223_p7 = scmp.lt.s32.totalorder %s736_s13, 1  ;;  %p509_p10 = scmp.ne.s32.totalorder %s732_s12, 0 }
  0x56   : > { %vm236_vm0 = vcmask (!%p509_p10), 64512   ;;  %v752_v0 = vmov (!%p509_p10), 0.0   ;;  %v753_v1 = vmov (!%p509_p10), 1.0  }
  0x57   : > { %s1017_s13 = smov (!%p223_p7, %s736_s13), 1  ;;  %235 = sbr.rel (%p509_p10) target bundleno = 94 (0x5e), region = 40 }
  0x58   : > { %s532_s24 = smul.u32 24, %s1017_s13  ;;  %242 = vst [vmem:[#allocation2 + $0x10] sm:$0xff] (!%p509_p10), %v752_v0  ;;  %240 = vst [vmem:[#allocation2] sm:$0xff] (!%p509_p10), %v752_v0 }
  0x59   : > { %241 = vst [vmem:[#allocation2 + $0x8] sm:$0xff] (!%p509_p10), %v752_v0  ;;  %243 = vst [vmem:[#allocation2 + $0x10] sm:$0x1] (!%p509_p10), %v753_v1 }
  0x5a   : > { %s948_s17 = scalar_lea.vmem %s993_s2, %s532_s24 }
  0x5b   : > { %237 = vst.msk [vmem:[%s948_s17] sm:$0xff] (!%p509_p10), %vm236_vm0, %v752_v0  ;;  %238 = vst.msk [vmem:[%s948_s17 + $0x8] sm:$0xff] (!%p509_p10), %vm236_vm0, %v752_v0 }
  0x5c   : > { %239 = vst.msk [vmem:[%s948_s17 + $0x10] sm:$0xff] (!%p509_p10), %vm236_vm0, %v752_v0 }
  0x5e PF: > { %v269_v2 = vlaneseq  ;;  %v754_v3 = vmov 0.0   ;;  %v244_v4 = vld [vmem:[%s186_s30] sm:$0xf]  ;;  %vm246_vm1 = vcmask 1043456   ;;  %vm755_vm2 = vmmov 0  }
  0x5f   : > { %530 = vmatprep.subr.mxu1 %v754_v3  ;;  %519 = vmatprep.subr.mxu0 %v754_v3  ;;  %v247_v6 = vsel %vm246_vm1, %v244_v4, -inf  ;;  %v510_v7 = vld [vmem:[%s194_s7] ss:$0 sm:$0xff]  ;;  %v756_v11 = vmov 1.0   ;;  %vm368_vm4 = vcmask 64512  }
  0x60   : > { %v270_v5 = vshrl.u32 %v269_v2, 7  ;;  %524 = vmatprep.mubr.msk.f32.mxu1 %vm755_vm2, %v754_v3  ;;  %521 = vmatprep.mubr.msk.f32.mxu0 %vm755_vm2, %v754_v3  ;;  %v248_v8 = vrot.slane %v247_v6, 4  ;;  %v281_v31 = vld [vmem:[#allocation2 + $0x10] sm:$0xff] }
  0x62   : > { %v271_v9 = vadd.s32 1, %v270_v5  ;;  %v249_v10 = vmax.f32 %v247_v6, %v248_v8  ;;  %v282_v32 = vld [vmem:[%s948_s17] sm:$0xff]  ;;  %v283_v33 = vld [vmem:[%s948_s17 + $0x8] sm:$0xff] }
  0x63   : > { %v284_v40 = vld [vmem:[%s948_s17 + $0x10] sm:$0xff] }
  0x64   : > { %vm276_vm3 = vcmp.eq.s32.totalorder %v510_v7, %v271_v9  ;;  %v250_v12 = vrot.slane %v249_v10, 2 }
  0x65   : > { %531 = vmatpush3.xpose.msk.msra.mxu1 %vm276_vm3, %v756_v11  ;;  %520 = vmatpush3.xpose.msk.msra.mxu0 %vm276_vm3, %v756_v11 }
  0x66   : > { %v251_v13 = vmax.f32 %v249_v10, %v250_v12 }
  0x68   : > { %v252_v14 = vrot.slane %v251_v13, 1 }
  0x6a   : > { %v253_v15 = vmax.f32 %v251_v13, %v252_v14 }
  0x6c   : > { %v254_v16 = vsub.f32 %v244_v4, %v253_v15 }
  0x6e   : > { %v255_v17 = vmul.f32 1.442695, %v254_v16 }
  0x70   : > { %614 = vpow2.f32 %v255_v17 }
  0x7a   : > { %v615_v18 = vpop.eup %614 }
  0x7b   : > { %v257_v19 = vsel %vm246_vm1, %v615_v18, 0.0 }
  0x7c   : > { %v258_v20 = vrot.slane %v257_v19, 4 }
  0x7e   : > { %v259_v21 = vadd.f32 %v258_v20, %v257_v19 }
  0x80   : > { %v260_v22 = vrot.slane %v259_v21, 2 }
  0x82   : > { %v261_v23 = vadd.f32 %v260_v22, %v259_v21 }
  0x84   : > { %v262_v24 = vrot.slane %v261_v23, 1 }
  0x86   : > { %v263_v25 = vadd.f32 %v262_v24, %v261_v23 }
  0x88   : > { %616 = vrcp.f32 %v263_v25 }
  0x92   : > { %v617_v26 = vpop.eup %616 }
  0x93   : > { %v265_v27 = vmul.f32 %v617_v26, %v615_v18 }
  0x95   : > { %v267_v28 = vmul.f32 %v265_v27, %v265_v27  ;;  %266 = vst [vmem:[#allocation2] sm:$0xf] %v265_v27 }
  0x97   : > { %268 = vst [vmem:[#allocation2 + $0x8] sm:$0xf] %v267_v28 }
  0x9c   : > { %v279_v29 = vld [vmem:[#allocation2] sm:$0xff] }
  0x9d   : > { %522 = vmatmul.mubr.f32.vlgmr.msra.gmra.mrb[0].mxu0 %v279_v29 }
  0x9e   : > { %v280_v30 = vld [vmem:[#allocation2 + $0x8] sm:$0xff] }
  0x9f   : > { %525 = vmatmul.mubr.f32.vlgmr.msra.gmra.mrb[0].mxu1 %v280_v30 }
  0xa0   : > { %527 = vmatprep.mubr.msk.f32.mxu1 %vm755_vm2, %v754_v3 }
  0xa3   : > { %528 = vmatmul.mubr.f32.gmra.mrb[2].mxu1 %v281_v31 }
 0x170   : > { %v351_v34 = vpop.f32.mrb[0].mxu0 }
 0x171   : > { %v365_v35 = vadd.f32 %v351_v34, %v282_v32  ;;  %v523_v36 = vpop.f32.mrb[1].mxu0 }
 0x172   : > { %v356_v37 = vpop.f32.mrb[0].mxu1 }
 0x173   : > { %v366_v38 = vadd.f32 %v356_v37, %v283_v33  ;;  %v526_v39 = vpop.f32.mrb[1].mxu1  ;;  %369 = vst.msk [vmem:[%s948_s17] sm:$0xff] %vm368_vm4, %v365_v35 }
 0x175   : > { %370 = vst.msk [vmem:[%s948_s17 + $0x8] sm:$0xff] %vm368_vm4, %v366_v38 }
 0x176   : > { %v361_v41 = vpop.f32.mrb[2].mxu1 }
 0x177   : > { %v367_v42 = vadd.f32 %v361_v41, %v284_v40  ;;  %v529_v43 = vpop.f32.mrb[3].mxu1 }
 0x179   : > { %371 = vst.msk [vmem:[%s948_s17 + $0x10] sm:$0xff] %vm368_vm4, %v367_v42 }
 0x17a PF: > { %s18_s16 = sadd.s32 1, %s748_s16   ;;  %s1003_s9 = smov %s724_s10 }
 0x17b   : > { %p15_p8 = scmp.ge.s32.totalorder %s18_s16, 6   ;;  %s1004_s10 = smov %s728_s11 }
 0x17c   : > { %s1005_s11 = smov %s842_s29  ;;  %s1006_s12 = smov %s740_s14 }
 0x17d   : > { %s1007_s13 = smov %s744_s15  ;;  %s1008_s14 = smov %s1011_s18 }
 0x17e   : > { %s1009_s15 = smov %s1015_s19  ;;  %17 = sbr.rel (!%p15_p8) target bundleno = 7 (0x7), region = 85 }
 0x185   :  { %401 = vsyncpa [#allocation4], 1 }
 0x186   :  { %403 = vsyncpa [#allocation4 + $0x1], 1 }
 0x187   :  { %404 = vsyncpa [#allocation6], 1 }
 0x188   :  { %406 = vsyncpa [#allocation6 + $0x1], 1 }

</bundles_post_ra>
